<compile_context>
chip_gen: v7x
topology: tpu7x:2x2x1
jax: 0.10.0
libtpu: 0.0.40
codegen_flags: <defaults>
</compile_context>

<pallas_src>
import math
import functools

import jax
import jax.numpy as jnp
from jax import lax
from jax.experimental import pallas as pl
from jax.experimental.pallas import tpu as pltpu  # noqa: F401  (kept for parity / future tiling)


# ----------------------------- fused kernel ----------------------------------


def fused_self_attention_kernel(x_ref, w_qkv_ref, b_qkv_ref, w_proj_ref,
                                b_proj_ref, o_ref, *, B, L, n_head, scale):
    """Single invocation: QKV proj + causal MHA + output proj, all in VMEM."""
    C = x_ref.shape[-1]
    D = C // n_head

    # ---- fused QKV projection over ALL B*L rows at once ---------------------
    # bf16 MXU operands, f32 accumulation; bias added in f32.
    x = x_ref[...].astype(jnp.bfloat16)                                 # (B*L, C)
    qkv = jnp.dot(x, w_qkv_ref[...],
                  preferred_element_type=jnp.float32) + b_qkv_ref[...]  # (B*L, 3C) f32

    # Aligned 32-lane slab slices first, then (B, L, C) views (cheap reshape:
    # only splits the sublane dim at a tile boundary).
    q_all = qkv[:, 0 * C:1 * C].reshape(B, L, C)
    k_all = qkv[:, 1 * C:2 * C].reshape(B, L, C)
    v_all = qkv[:, 2 * C:3 * C].reshape(B, L, C)

    # Causal mask, built once, broadcast over batch.  Large finite negative
    # instead of -inf (robust; diagonal is always unmasked).
    row = lax.broadcasted_iota(jnp.int32, (L, L), 0)
    col = lax.broadcasted_iota(jnp.int32, (L, L), 1)
    causal = (col <= row)[None, :, :]                                   # (1, L, L)

    # ---- per-head attention, batched over B (leading batch dim) -------------
    head_outs = []
    for h in range(n_head):
        sl = slice(h * D, (h + 1) * D)
        q = q_all[:, :, sl].astype(jnp.bfloat16)                        # (B, L, D)
        k = k_all[:, :, sl].astype(jnp.bfloat16)
        v = v_all[:, :, sl].astype(jnp.bfloat16)

        # q @ k^T contracting on D, batched over B — no explicit transpose.
        s = jnp.einsum("bqd,bkd->bqk", q, k,
                       preferred_element_type=jnp.float32) * scale      # (B, L, L)
        s = jnp.where(causal, s, -1e30)

        # Softmax entirely in f32 (v5e-safe); EUP approximate reciprocal keeps
        # the divide off the VALU slot.
        s = s - jnp.max(s, axis=-1, keepdims=True)
        p = jnp.exp(s)
        p = p * pl.reciprocal(jnp.sum(p, axis=-1, keepdims=True), approx=True)

        head_outs.append(
            jnp.einsum("bqk,bkd->bqd", p.astype(jnp.bfloat16), v,
                       preferred_element_type=jnp.float32))             # (B, L, D)

    # Register concat of head outputs -> (B, L, C); no VMEM scratch needed.
    y = jnp.concatenate(head_outs, axis=-1).reshape(B * L, C)

    # ---- fused output projection --------------------------------------------
    out = jnp.dot(y.astype(jnp.bfloat16), w_proj_ref[...],
                  preferred_element_type=jnp.float32) + b_proj_ref[...]
    o_ref[...] = out.astype(o_ref.dtype)


def self_attention_forward(x, params, n_head):
    """Forward pass matching torch SelfAttention.forward for x of shape (B, L, C)."""
    B, L, C = x.shape
    D = C // n_head
    scale = 1.0 / math.sqrt(D)
    kernel = functools.partial(fused_self_attention_kernel,
                               B=B, L=L, n_head=n_head, scale=scale)

    # No grid / no BlockSpecs: a single invocation with every operand copied to
    # VMEM once (everything is KBs at these shapes).
    out2d = pl.pallas_call(
        kernel,
        out_shape=jax.ShapeDtypeStruct((B * L, C), x.dtype),
    )(
        x.reshape(B * L, C),                         # activations (f32, cast in-kernel)
        params["w_qkv"].astype(jnp.bfloat16),        # MXU operand in bf16 (halves DMA)
        params["b_qkv"].reshape(1, 3 * C),           # bias stays f32
        params["w_proj"].astype(jnp.bfloat16),
        params["b_proj"].reshape(1, C),
    )
    return out2d.reshape(B, L, C)


# --------------------------- params & reference --------------------------------


def init_params(key, n_embed):
    """Deterministic parameter init (shapes match nn.Linear(n_embed, 3*n_embed) etc.).

    Weights stored as (in_features, out_features) so y = x @ W + b matches
    torch's x @ W.T + b."""
    k1, k2, k3, k4 = jax.random.split(key, 4)
    bound = 1.0 / math.sqrt(n_embed)
    return {
        "w_qkv": jax.random.uniform(k1, (n_embed, 3 * n_embed), jnp.float32,
                                    -bound, bound),
        "b_qkv": jax.random.uniform(k2, (3 * n_embed,), jnp.float32,
                                    -bound, bound),
        "w_proj": jax.random.uniform(k3, (n_embed, n_embed), jnp.float32,
                                     -bound, bound),
        "b_proj": jax.random.uniform(k4, (n_embed,), jnp.float32,
                                     -bound, bound),
    }


def reference_forward(x, params, n_head):
    """Pure-JAX f32 reference for correctness checking (mirrors the torch module)."""
    B, L, C = x.shape
    D = C // n_head
    qkv = x.reshape(B * L, C) @ params["w_qkv"] + params["b_qkv"]
    qkv = qkv.reshape(B, L, 3 * C)
    q, k, v = jnp.split(qkv, 3, axis=2)
    q = q.reshape(B, L, n_head, D).transpose(0, 2, 1, 3)
    k = k.reshape(B, L, n_head, D).transpose(0, 2, 1, 3)
    v = v.reshape(B, L, n_head, D).transpose(0, 2, 1, 3)
    s = jnp.einsum("bhqd,bhkd->bhqk", q, k) / math.sqrt(D)
    mask = jnp.tril(jnp.ones((L, L), bool))
    s = jnp.where(mask[None, None], s, -jnp.inf)
    p = jax.nn.softmax(s, axis=-1)
    y = jnp.einsum("bhqk,bhkd->bhqd", p, v)
    y = y.transpose(0, 2, 1, 3).reshape(B, L, C)
    return (y.reshape(B * L, C) @ params["w_proj"] + params["b_proj"]).reshape(B, L, C)


if __name__ == "__main__":
    # config: n_embed=32, n_head=4, block_size=8  ->  B=2, L=8, C=32
    B, L, C, n_head = 2, 8, 32, 4

    key = jax.random.PRNGKey(0)
    kx, kp = jax.random.split(key)
    x = jax.random.normal(kx, (B, L, C), jnp.float32)
    params = init_params(kp, C)

    out = jax.block_until_ready(self_attention_forward(x, params, n_head))
    ref = reference_forward(x, params, n_head)

    assert out.shape == (B, L, C)
    # Tolerance accounts for bf16 MXU operands (f32 accumulation) and the EUP
    # approximate reciprocal in the softmax; observed error is ~1e-2 absolute.
    assert jnp.allclose(out, ref, atol=3e-2, rtol=3e-2), "mismatch vs reference"

    print("KERNEL_OK")
</pallas_src>

<mosaic_0001>
module attributes {stable_mosaic.version = 11 : i64} {
  func.func @fused_self_attention_kernel(%arg0: memref<16x32xf32, #tpu.memory_space<vmem>>, %arg1: memref<32x96xbf16, #tpu.memory_space<vmem>>, %arg2: memref<1x96xf32, #tpu.memory_space<vmem>>, %arg3: memref<32x32xbf16, #tpu.memory_space<vmem>>, %arg4: memref<1x32xf32, #tpu.memory_space<vmem>>, %arg5: memref<16x32xf32, #tpu.memory_space<vmem>>) attributes {dimension_semantics = [], scalar_prefetch = 0 : i64, scratch_operands = 0 : i64, tpu.core_type = #tpu.core_type<tc>} {
    %c0 = arith.constant 0 : index
    %c0_0 = arith.constant 0 : index
    %0 = vector.load %arg0[%c0, %c0_0] : memref<16x32xf32, #tpu.memory_space<vmem>>, vector<16x32xf32>
    %1 = arith.truncf %0 : vector<16x32xf32> to vector<16x32xbf16>
    %c0_1 = arith.constant 0 : index
    %c0_2 = arith.constant 0 : index
    %2 = vector.load %arg1[%c0_1, %c0_2] : memref<32x96xbf16, #tpu.memory_space<vmem>>, vector<32x96xbf16>
    %cst = arith.constant dense<0.000000e+00> : vector<16x96xf32>
    %3 = tpu.matmul %1, %2, %cst {dimension_numbers = #tpu.dot_dimension_numbers<[1], [0], [0], [1], [0, 0, 1, 1], [], []>} : vector<16x32xbf16>, vector<32x96xbf16>, vector<16x96xf32> -> vector<16x96xf32>
    %c0_3 = arith.constant 0 : index
    %c0_4 = arith.constant 0 : index
    %4 = vector.load %arg2[%c0_3, %c0_4] : memref<1x96xf32, #tpu.memory_space<vmem>>, vector<1x96xf32>
    %5 = vector.broadcast %4 : vector<1x96xf32> to vector<16x96xf32>
    %6 = arith.addf %3, %5 : vector<16x96xf32>
    %7 = vector.extract_strided_slice %6 {offsets = [0, 0], sizes = [16, 32], strides = [1, 1]} : vector<16x96xf32> to vector<16x32xf32>
    %8 = vector.shape_cast %7 : vector<16x32xf32> to vector<2x8x32xf32>
    %9 = vector.extract_strided_slice %6 {offsets = [0, 32], sizes = [16, 32], strides = [1, 1]} : vector<16x96xf32> to vector<16x32xf32>
    %10 = vector.shape_cast %9 : vector<16x32xf32> to vector<2x8x32xf32>
    %11 = vector.extract_strided_slice %6 {offsets = [0, 64], sizes = [16, 32], strides = [1, 1]} : vector<16x96xf32> to vector<16x32xf32>
    %12 = vector.shape_cast %11 : vector<16x32xf32> to vector<2x8x32xf32>
    %13 = tpu.iota {dimensions = array<i32: 0>} : vector<8x8xi32>
    %14 = tpu.iota {dimensions = array<i32: 1>} : vector<8x8xi32>
    %15 = arith.cmpi sle, %14, %13 : vector<8x8xi32>
    %16 = vector.shape_cast %15 : vector<8x8xi1> to vector<1x8x8xi1>
    %17 = vector.extract_strided_slice %8 {offsets = [0, 0, 0], sizes = [2, 8, 8], strides = [1, 1, 1]} : vector<2x8x32xf32> to vector<2x8x8xf32>
    %18 = arith.truncf %17 : vector<2x8x8xf32> to vector<2x8x8xbf16>
    %19 = vector.extract_strided_slice %10 {offsets = [0, 0, 0], sizes = [2, 8, 8], strides = [1, 1, 1]} : vector<2x8x32xf32> to vector<2x8x8xf32>
    %20 = arith.truncf %19 : vector<2x8x8xf32> to vector<2x8x8xbf16>
    %21 = vector.extract_strided_slice %12 {offsets = [0, 0, 0], sizes = [2, 8, 8], strides = [1, 1, 1]} : vector<2x8x32xf32> to vector<2x8x8xf32>
    %22 = arith.truncf %21 : vector<2x8x8xf32> to vector<2x8x8xbf16>
    "tpu.trace_start"() <{level = 10 : i32, message = "bqd,bkd->bqk"}> : () -> ()
    %cst_5 = arith.constant dense<0.000000e+00> : vector<2x8x8xf32>
    %23 = tpu.matmul %18, %20, %cst_5 {dimension_numbers = #tpu.dot_dimension_numbers<[2], [2], [1], [1], [0, 0, 0, 1, 1, 1], [0], [0]>} : vector<2x8x8xbf16>, vector<2x8x8xbf16>, vector<2x8x8xf32> -> vector<2x8x8xf32>
    "tpu.trace_stop"() : () -> ()
    %cst_6 = arith.constant 0.353553385 : f32
    %24 = vector.broadcast %cst_6 : f32 to vector<2x8x8xf32>
    %25 = arith.mulf %23, %24 : vector<2x8x8xf32>
    %cst_7 = arith.constant -1.000000e+30 : f32
    %26 = vector.shape_cast %16 : vector<1x8x8xi1> to vector<1x8x8xi1>
    %27 = vector.broadcast %26 : vector<1x8x8xi1> to vector<2x8x8xi1>
    %28 = vector.broadcast %cst_7 : f32 to vector<2x8x8xf32>
    %29 = arith.select %27, %25, %28 : vector<2x8x8xi1>, vector<2x8x8xf32>
    %cst_8 = arith.constant dense<0xFF800000> : vector<2x8xf32>
    %30 = vector.multi_reduction <maximumf>, %29, %cst_8 [2] : vector<2x8x8xf32> to vector<2x8xf32>
    %31 = vector.shape_cast %30 : vector<2x8xf32> to vector<2x8x1xf32>
    %32 = vector.broadcast %31 : vector<2x8x1xf32> to vector<2x8x8xf32>
    %33 = arith.subf %29, %32 : vector<2x8x8xf32>
    %34 = math.exp %33 : vector<2x8x8xf32>
    %cst_9 = arith.constant dense<0.000000e+00> : vector<2x8xf32>
    %35 = vector.multi_reduction <add>, %34, %cst_9 [2] : vector<2x8x8xf32> to vector<2x8xf32>
    %36 = vector.shape_cast %35 : vector<2x8xf32> to vector<2x8x1xf32>
    %37 = tpu.reciprocal %36 {approx = true} : vector<2x8x1xf32> -> vector<2x8x1xf32>
    %38 = vector.broadcast %37 : vector<2x8x1xf32> to vector<2x8x8xf32>
    %39 = arith.mulf %34, %38 : vector<2x8x8xf32>
    %40 = arith.truncf %39 : vector<2x8x8xf32> to vector<2x8x8xbf16>
    "tpu.trace_start"() <{level = 10 : i32, message = "bqk,bkd->bqd"}> : () -> ()
    %cst_10 = arith.constant dense<0.000000e+00> : vector<2x8x8xf32>
    %41 = tpu.matmul %40, %22, %cst_10 {dimension_numbers = #tpu.dot_dimension_numbers<[2], [1], [1], [2], [0, 0, 0, 1, 1, 2], [0], [0]>} : vector<2x8x8xbf16>, vector<2x8x8xbf16>, vector<2x8x8xf32> -> vector<2x8x8xf32>
    "tpu.trace_stop"() : () -> ()
    %42 = vector.extract_strided_slice %8 {offsets = [0, 0, 8], sizes = [2, 8, 8], strides = [1, 1, 1]} : vector<2x8x32xf32> to vector<2x8x8xf32>
    %43 = arith.truncf %42 : vector<2x8x8xf32> to vector<2x8x8xbf16>
    %44 = vector.extract_strided_slice %10 {offsets = [0, 0, 8], sizes = [2, 8, 8], strides = [1, 1, 1]} : vector<2x8x32xf32> to vector<2x8x8xf32>
    %45 = arith.truncf %44 : vector<2x8x8xf32> to vector<2x8x8xbf16>
    %46 = vector.extract_strided_slice %12 {offsets = [0, 0, 8], sizes = [2, 8, 8], strides = [1, 1, 1]} : vector<2x8x32xf32> to vector<2x8x8xf32>
    %47 = arith.truncf %46 : vector<2x8x8xf32> to vector<2x8x8xbf16>
    "tpu.trace_start"() <{level = 10 : i32, message = "bqd,bkd->bqk"}> : () -> ()
    %cst_11 = arith.constant dense<0.000000e+00> : vector<2x8x8xf32>
    %48 = tpu.matmul %43, %45, %cst_11 {dimension_numbers = #tpu.dot_dimension_numbers<[2], [2], [1], [1], [0, 0, 0, 1, 1, 1], [0], [0]>} : vector<2x8x8xbf16>, vector<2x8x8xbf16>, vector<2x8x8xf32> -> vector<2x8x8xf32>
    "tpu.trace_stop"() : () -> ()
    %cst_12 = arith.constant 0.353553385 : f32
    %49 = vector.broadcast %cst_12 : f32 to vector<2x8x8xf32>
    %50 = arith.mulf %48, %49 : vector<2x8x8xf32>
    %cst_13 = arith.constant -1.000000e+30 : f32
    %51 = vector.shape_cast %16 : vector<1x8x8xi1> to vector<1x8x8xi1>
    %52 = vector.broadcast %51 : vector<1x8x8xi1> to vector<2x8x8xi1>
    %53 = vector.broadcast %cst_13 : f32 to vector<2x8x8xf32>
    %54 = arith.select %52, %50, %53 : vector<2x8x8xi1>, vector<2x8x8xf32>
    %cst_14 = arith.constant dense<0xFF800000> : vector<2x8xf32>
    %55 = vector.multi_reduction <maximumf>, %54, %cst_14 [2] : vector<2x8x8xf32> to vector<2x8xf32>
    %56 = vector.shape_cast %55 : vector<2x8xf32> to vector<2x8x1xf32>
    %57 = vector.broadcast %56 : vector<2x8x1xf32> to vector<2x8x8xf32>
    %58 = arith.subf %54, %57 : vector<2x8x8xf32>
    %59 = math.exp %58 : vector<2x8x8xf32>
    %cst_15 = arith.constant dense<0.000000e+00> : vector<2x8xf32>
    %60 = vector.multi_reduction <add>, %59, %cst_15 [2] : vector<2x8x8xf32> to vector<2x8xf32>
    %61 = vector.shape_cast %60 : vector<2x8xf32> to vector<2x8x1xf32>
    %62 = tpu.reciprocal %61 {approx = true} : vector<2x8x1xf32> -> vector<2x8x1xf32>
    %63 = vector.broadcast %62 : vector<2x8x1xf32> to vector<2x8x8xf32>
    %64 = arith.mulf %59, %63 : vector<2x8x8xf32>
    %65 = arith.truncf %64 : vector<2x8x8xf32> to vector<2x8x8xbf16>
    "tpu.trace_start"() <{level = 10 : i32, message = "bqk,bkd->bqd"}> : () -> ()
    %cst_16 = arith.constant dense<0.000000e+00> : vector<2x8x8xf32>
    %66 = tpu.matmul %65, %47, %cst_16 {dimension_numbers = #tpu.dot_dimension_numbers<[2], [1], [1], [2], [0, 0, 0, 1, 1, 2], [0], [0]>} : vector<2x8x8xbf16>, vector<2x8x8xbf16>, vector<2x8x8xf32> -> vector<2x8x8xf32>
    "tpu.trace_stop"() : () -> ()
    %67 = vector.extract_strided_slice %8 {offsets = [0, 0, 16], sizes = [2, 8, 8], strides = [1, 1, 1]} : vector<2x8x32xf32> to vector<2x8x8xf32>
    %68 = arith.truncf %67 : vector<2x8x8xf32> to vector<2x8x8xbf16>
    %69 = vector.extract_strided_slice %10 {offsets = [0, 0, 16], sizes = [2, 8, 8], strides = [1, 1, 1]} : vector<2x8x32xf32> to vector<2x8x8xf32>
    %70 = arith.truncf %69 : vector<2x8x8xf32> to vector<2x8x8xbf16>
    %71 = vector.extract_strided_slice %12 {offsets = [0, 0, 16], sizes = [2, 8, 8], strides = [1, 1, 1]} : vector<2x8x32xf32> to vector<2x8x8xf32>
    %72 = arith.truncf %71 : vector<2x8x8xf32> to vector<2x8x8xbf16>
    "tpu.trace_start"() <{level = 10 : i32, message = "bqd,bkd->bqk"}> : () -> ()
    %cst_17 = arith.constant dense<0.000000e+00> : vector<2x8x8xf32>
    %73 = tpu.matmul %68, %70, %cst_17 {dimension_numbers = #tpu.dot_dimension_numbers<[2], [2], [1], [1], [0, 0, 0, 1, 1, 1], [0], [0]>} : vector<2x8x8xbf16>, vector<2x8x8xbf16>, vector<2x8x8xf32> -> vector<2x8x8xf32>
    "tpu.trace_stop"() : () -> ()
    %cst_18 = arith.constant 0.353553385 : f32
    %74 = vector.broadcast %cst_18 : f32 to vector<2x8x8xf32>
    %75 = arith.mulf %73, %74 : vector<2x8x8xf32>
    %cst_19 = arith.constant -1.000000e+30 : f32
    %76 = vector.shape_cast %16 : vector<1x8x8xi1> to vector<1x8x8xi1>
    %77 = vector.broadcast %76 : vector<1x8x8xi1> to vector<2x8x8xi1>
    %78 = vector.broadcast %cst_19 : f32 to vector<2x8x8xf32>
    %79 = arith.select %77, %75, %78 : vector<2x8x8xi1>, vector<2x8x8xf32>
    %cst_20 = arith.constant dense<0xFF800000> : vector<2x8xf32>
    %80 = vector.multi_reduction <maximumf>, %79, %cst_20 [2] : vector<2x8x8xf32> to vector<2x8xf32>
    %81 = vector.shape_cast %80 : vector<2x8xf32> to vector<2x8x1xf32>
    %82 = vector.broadcast %81 : vector<2x8x1xf32> to vector<2x8x8xf32>
    %83 = arith.subf %79, %82 : vector<2x8x8xf32>
    %84 = math.exp %83 : vector<2x8x8xf32>
    %cst_21 = arith.constant dense<0.000000e+00> : vector<2x8xf32>
    %85 = vector.multi_reduction <add>, %84, %cst_21 [2] : vector<2x8x8xf32> to vector<2x8xf32>
    %86 = vector.shape_cast %85 : vector<2x8xf32> to vector<2x8x1xf32>
    %87 = tpu.reciprocal %86 {approx = true} : vector<2x8x1xf32> -> vector<2x8x1xf32>
    %88 = vector.broadcast %87 : vector<2x8x1xf32> to vector<2x8x8xf32>
    %89 = arith.mulf %84, %88 : vector<2x8x8xf32>
    %90 = arith.truncf %89 : vector<2x8x8xf32> to vector<2x8x8xbf16>
    "tpu.trace_start"() <{level = 10 : i32, message = "bqk,bkd->bqd"}> : () -> ()
    %cst_22 = arith.constant dense<0.000000e+00> : vector<2x8x8xf32>
    %91 = tpu.matmul %90, %72, %cst_22 {dimension_numbers = #tpu.dot_dimension_numbers<[2], [1], [1], [2], [0, 0, 0, 1, 1, 2], [0], [0]>} : vector<2x8x8xbf16>, vector<2x8x8xbf16>, vector<2x8x8xf32> -> vector<2x8x8xf32>
    "tpu.trace_stop"() : () -> ()
    %92 = vector.extract_strided_slice %8 {offsets = [0, 0, 24], sizes = [2, 8, 8], strides = [1, 1, 1]} : vector<2x8x32xf32> to vector<2x8x8xf32>
    %93 = arith.truncf %92 : vector<2x8x8xf32> to vector<2x8x8xbf16>
    %94 = vector.extract_strided_slice %10 {offsets = [0, 0, 24], sizes = [2, 8, 8], strides = [1, 1, 1]} : vector<2x8x32xf32> to vector<2x8x8xf32>
    %95 = arith.truncf %94 : vector<2x8x8xf32> to vector<2x8x8xbf16>
    %96 = vector.extract_strided_slice %12 {offsets = [0, 0, 24], sizes = [2, 8, 8], strides = [1, 1, 1]} : vector<2x8x32xf32> to vector<2x8x8xf32>
    %97 = arith.truncf %96 : vector<2x8x8xf32> to vector<2x8x8xbf16>
    "tpu.trace_start"() <{level = 10 : i32, message = "bqd,bkd->bqk"}> : () -> ()
    %cst_23 = arith.constant dense<0.000000e+00> : vector<2x8x8xf32>
    %98 = tpu.matmul %93, %95, %cst_23 {dimension_numbers = #tpu.dot_dimension_numbers<[2], [2], [1], [1], [0, 0, 0, 1, 1, 1], [0], [0]>} : vector<2x8x8xbf16>, vector<2x8x8xbf16>, vector<2x8x8xf32> -> vector<2x8x8xf32>
    "tpu.trace_stop"() : () -> ()
    %cst_24 = arith.constant 0.353553385 : f32
    %99 = vector.broadcast %cst_24 : f32 to vector<2x8x8xf32>
    %100 = arith.mulf %98, %99 : vector<2x8x8xf32>
    %cst_25 = arith.constant -1.000000e+30 : f32
    %101 = vector.shape_cast %16 : vector<1x8x8xi1> to vector<1x8x8xi1>
    %102 = vector.broadcast %101 : vector<1x8x8xi1> to vector<2x8x8xi1>
    %103 = vector.broadcast %cst_25 : f32 to vector<2x8x8xf32>
    %104 = arith.select %102, %100, %103 : vector<2x8x8xi1>, vector<2x8x8xf32>
    %cst_26 = arith.constant dense<0xFF800000> : vector<2x8xf32>
    %105 = vector.multi_reduction <maximumf>, %104, %cst_26 [2] : vector<2x8x8xf32> to vector<2x8xf32>
    %106 = vector.shape_cast %105 : vector<2x8xf32> to vector<2x8x1xf32>
    %107 = vector.broadcast %106 : vector<2x8x1xf32> to vector<2x8x8xf32>
    %108 = arith.subf %104, %107 : vector<2x8x8xf32>
    %109 = math.exp %108 : vector<2x8x8xf32>
    %cst_27 = arith.constant dense<0.000000e+00> : vector<2x8xf32>
    %110 = vector.multi_reduction <add>, %109, %cst_27 [2] : vector<2x8x8xf32> to vector<2x8xf32>
    %111 = vector.shape_cast %110 : vector<2x8xf32> to vector<2x8x1xf32>
    %112 = tpu.reciprocal %111 {approx = true} : vector<2x8x1xf32> -> vector<2x8x1xf32>
    %113 = vector.broadcast %112 : vector<2x8x1xf32> to vector<2x8x8xf32>
    %114 = arith.mulf %109, %113 : vector<2x8x8xf32>
    %115 = arith.truncf %114 : vector<2x8x8xf32> to vector<2x8x8xbf16>
    "tpu.trace_start"() <{level = 10 : i32, message = "bqk,bkd->bqd"}> : () -> ()
    %cst_28 = arith.constant dense<0.000000e+00> : vector<2x8x8xf32>
    %116 = tpu.matmul %115, %97, %cst_28 {dimension_numbers = #tpu.dot_dimension_numbers<[2], [1], [1], [2], [0, 0, 0, 1, 1, 2], [0], [0]>} : vector<2x8x8xbf16>, vector<2x8x8xbf16>, vector<2x8x8xf32> -> vector<2x8x8xf32>
    "tpu.trace_stop"() : () -> ()
    %117 = tpu.concatenate %41, %66, %91, %116 in 2 : vector<2x8x8xf32>, vector<2x8x8xf32>, vector<2x8x8xf32>, vector<2x8x8xf32> -> vector<2x8x32xf32>
    %118 = vector.shape_cast %117 : vector<2x8x32xf32> to vector<16x32xf32>
    %119 = arith.truncf %118 : vector<16x32xf32> to vector<16x32xbf16>
    %c0_29 = arith.constant 0 : index
    %c0_30 = arith.constant 0 : index
    %120 = vector.load %arg3[%c0_29, %c0_30] : memref<32x32xbf16, #tpu.memory_space<vmem>>, vector<32x32xbf16>
    %cst_31 = arith.constant dense<0.000000e+00> : vector<16x32xf32>
    %121 = tpu.matmul %119, %120, %cst_31 {dimension_numbers = #tpu.dot_dimension_numbers<[1], [0], [0], [1], [0, 0, 1, 1], [], []>} : vector<16x32xbf16>, vector<32x32xbf16>, vector<16x32xf32> -> vector<16x32xf32>
    %c0_32 = arith.constant 0 : index
    %c0_33 = arith.constant 0 : index
    %122 = vector.load %arg4[%c0_32, %c0_33] : memref<1x32xf32, #tpu.memory_space<vmem>>, vector<1x32xf32>
    %123 = vector.broadcast %122 : vector<1x32xf32> to vector<16x32xf32>
    %124 = arith.addf %121, %123 : vector<16x32xf32>
    %c0_34 = arith.constant 0 : index
    %c0_35 = arith.constant 0 : index
    %125 = vector.load %arg5[%c0_34, %c0_35] : memref<16x32xf32, #tpu.memory_space<vmem>>, vector<16x32xf32>
    tpu.vector_store %arg5[%c0_34, %c0_35], %124 {strides = array<i32>} : memref<16x32xf32, #tpu.memory_space<vmem>>, vector<16x32xf32>,
    return
  }
}

</mosaic_0001>

<bundles_post_ra>
// kernel: tpu_custom_call.1
= control target key start
LH: loop header
LB: loop body
LE: loop exit
PB: predicated region body
PF: predicated region fallthrough
CT: control target
= control target key end

     0   :  { %10 = vsyncpa [#allocation3], 0  ;;  %s1794_s0 = inlined_call_operand.hbm [shape: f32[16,32], index: 0, kind: input, shape index: {}]   ;;  %s1795_s1 = inlined_call_operand.hbm [shape: bf16[32,96], index: 1, kind: input, shape index: {}]   ;;  %s1796_s2 = inlined_call_operand.vmem [shape: f32[1,96], index: 2, kind: input, shape index: {}]   ;;  %s1797_s3 = inlined_call_operand.hbm [shape: bf16[32,32], index: 3, kind: input, shape index: {}]   ;;  %s1798_s4 = inlined_call_operand.vmem [shape: f32[1,32], index: 4, kind: input, shape index: {}]   ;;  %s1799_s5 = inlined_call_operand.hbm [shape: f32[16,32], index: 5, kind: output, shape index: {}]  }
   0x1   :  { %11 = vsyncpa [#allocation6], 0 }
   0x2   :  { %12 = vsyncpa [#allocation4], 0  ;;  %s1500_s18 = smov [#allocation5]   ;;  %s1406_s22 = scalar_lea.hbm %s1795_s1, 256 }
   0x3   :  { %s30_s19 = sshll.u32 %s1500_s18, 4  ;;  %p1407_p0 = scmp.ne.s32.totalorder %s1795_s1, %s1406_s22  ;;  %s31_s19 = int_to_ptr.vmem [resolvable:$true] %s30_s19 }
   0x4   :  { %p1410_p1 = scmp.lt.u32.totalorder %s1406_s22, %s1795_s1 }
   0x6   :  { %p1412_p2 = pnand %p1410_p1, %p1407_p0 }
   0x8   :  { %1415 = shalt.err (!%p1412_p2)
}
   0x9   :  { %s1416_s27 = scalar_lea.vmem %s31_s19, 256  ;;  %p1421_p4 = scmp.lt.s32.totalorder %s31_s19, %s31_s19 }
   0xa   :  { %p1417_p3 = scmp.ne.s32.totalorder %s31_s19, %s1416_s27  ;;  %p1422_p5 = scmp.lt.s32.totalorder %s1416_s27, %s1416_s27 }
   0xc   :  { %p1423_p6 = por %p1422_p5, %p1421_p4 }
   0xe   :  { %p1424_p7 = pnand %p1423_p6, %p1417_p3 }
  0x10   :  { %1427 = shalt.err (!%p1424_p7)
}
  0x11   :  { %s1501_s28 = smov 64   ;;  %s1502_s29 = smov 4  }
  0x12   :  { %36 = dma.hbm_to_vmem [thread:$0]  %s1795_s1, 256, %s31_s19, [#allocation6], %s1501_s28, %s1501_s28, %s1502_s29  }
  0x13   :  { %s1503_s7 = smov [#allocation2]   ;;  %s1428_s11 = scalar_lea.hbm %s1794_s0, 256 }
  0x14   :  { %s18_s8 = sshll.u32 %s1503_s7, 4  ;;  %p1429_p8 = scmp.ne.s32.totalorder %s1794_s0, %s1428_s11  ;;  %s19_s8 = int_to_ptr.vmem [resolvable:$true] %s18_s8 }
  0x15   :  { %p1432_p9 = scmp.lt.u32.totalorder %s1428_s11, %s1794_s0 }
  0x17   :  { %p1434_p10 = pnand %p1432_p9, %p1429_p8 }
  0x19   :  { %1437 = shalt.err (!%p1434_p10)
}
  0x1a   :  { %s1438_s16 = scalar_lea.vmem %s19_s8, 256  ;;  %p1443_p12 = scmp.lt.s32.totalorder %s19_s8, %s19_s8 }
  0x1b   :  { %p1439_p11 = scmp.ne.s32.totalorder %s19_s8, %s1438_s16  ;;  %p1444_p13 = scmp.lt.s32.totalorder %s1438_s16, %s1438_s16 }
  0x1d   :  { %p1445_p0 = por %p1444_p13, %p1443_p12 }
  0x1f   :  { %p1446_p1 = pnand %p1445_p0, %p1439_p11 }
  0x21   :  { %1449 = shalt.err (!%p1446_p1)
}
  0x22   :  { %s1504_s1 = smov 128   ;;  %s1505_s17 = smov 8  }
  0x23   :  { %24 = dma.hbm_to_vmem [thread:$0]  %s1794_s0, 256, %s19_s8, [#allocation3], %s1504_s1, %s1504_s1, %s1505_s17  }
  0x24   :  { %s1506_s20 = smov [#allocation7]   ;;  %s1450_s24 = scalar_lea.hbm %s1797_s3, 256 }
  0x25   :  { %s44_s21 = sshll.u32 %s1506_s20, 4  ;;  %p1451_p2 = scmp.ne.s32.totalorder %s1797_s3, %s1450_s24  ;;  %s45_s21 = int_to_ptr.vmem [resolvable:$true] %s44_s21 }
  0x26   :  { %p1454_p3 = scmp.lt.u32.totalorder %s1450_s24, %s1797_s3 }
  0x28   :  { %p1456_p4 = pnand %p1454_p3, %p1451_p2 }
  0x2a   :  { %1459 = shalt.err (!%p1456_p4)
}
  0x2b   :  { %s1460_s6 = scalar_lea.vmem %s45_s21, 256  ;;  %p1465_p6 = scmp.lt.s32.totalorder %s45_s21, %s45_s21 }
  0x2c   :  { %p1461_p5 = scmp.ne.s32.totalorder %s45_s21, %s1460_s6  ;;  %p1466_p7 = scmp.lt.s32.totalorder %s1460_s6, %s1460_s6 }
  0x2e   :  { %p1467_p8 = por %p1466_p7, %p1465_p6 }
  0x30   :  { %p1468_p9 = pnand %p1467_p8, %p1461_p5 }
  0x32   :  { %1471 = shalt.err (!%p1468_p9)
}
  0x33   :  { %50 = dma.hbm_to_vmem [thread:$0]  %s1797_s3, 256, %s45_s21, [#allocation6], %s1501_s28, %s1501_s28, %s1502_s29  }
  0x34   :  { %1494 = dma.done.wait [#allocation3], 256  }
  0x35   :  { %1495 = vsyncadd [#allocation3], 4294967040 }
  0x36   :  { %1496 = dma.done.wait [#allocation6], 512  }
  0x37   :  { %1497 = vsyncadd [#allocation6], 4294966784  ;;  %v1507_v0 = vmov 0.0   ;;  %vm1508_vm0 = vmmov 0   ;;  %v1370_v1 = vld [vmem:[#allocation5] sm:$0xff]   ;;  %v1371_v2 = vld [vmem:[#allocation5 + $0x8] sm:$0xff]   ;;  %v134_v19 = vlaneseq }
  0x38   :  { %1221 = vmatprep.subr.bf16.mxu0 %v1507_v0  ;;  %1225 = vmatprep.mubr.msk.bf16.mxu0 %vm1508_vm0, %v1507_v0  ;;  %v63_v3 = vld [vmem:[#allocation2] sm:$0xff]  ;;  %v64_v4 = vld [vmem:[#allocation2 + $0x8] sm:$0xff]  ;;  %vm89_vm1 = vcmask 261120   ;;  %s1509_s8 = smov 96   ;;  %vm144_vm2 = vcmask 64512   ;;  %vm275_vm4 = vcmask 1043456  }
  0x39   :  { %1229 = vmatprep.subr.bf16.mxu1 %v1507_v0  ;;  %1231 = vmatprep.mubr.msk.bf16.mxu1 %vm1508_vm0, %v1507_v0  ;;  %v65_v5 = vpack.c.bf16 %v64_v4, %v63_v3  ;;  %v1159_v6 = vld [vmem:[%s1796_s2] ss:$0 sm:$0xff]  ;;  %v135_v20 = vshrl.u32 %v134_v19, 7  ;;  %v137_v21 = vand.u32 127, %v134_v19  ;;  %s1510_s2 = smov 88   ;;  %s1512_s9 = smov 56  }
  0x3a   :  { %1222 = vmatpush3.bf16.msra.mxu0 %v1370_v1  ;;  %s1513_s10 = smov 80   ;;  %s1514_s11 = smov 112   ;;  %vm1065_vm5 = vcmask 130048   ;;  %vm1068_vm6 = vcmask 195584  }
  0x3b   :  { %1223 = vmatprep.subr.bf16.mxu0 %v1507_v0  ;;  %vm1629_vm3 = vcmp.le.s32.totalorder %v137_v21, %v135_v20  ;;  %s1515_s12 = smov 48   ;;  %s1516_s13 = smov 72  }
  0x3c   :  { %s1517_s14 = smov 104   ;;  %s1518_s15 = smov 40  }
  0x3d   :  { %s1519_s16 = smov 16   ;;  %s1520_s18 = smov 24  }
  0x3e   :  { %1224 = vmatpush3.bf16.msra.mxu0 %v1371_v2  ;;  %s1521_s21 = smov [#allocation8]  }
  0x3f   :  { %1235 = vmatprep.subr.bf16.mxu0 %v1507_v0  ;;  %s1146_s22 = sshll.u32 %s1521_s21, 4  ;;  %s1147_s22 = int_to_ptr.vmem [resolvable:$true] %s1146_s22 }
  0x40   :  { %s1472_s23 = scalar_lea.vmem %s1147_s22, 256  ;;  %p1477_p11 = scmp.lt.s32.totalorder %s1147_s22, %s1147_s22 }
  0x41   :  { %1226 = vmatmul.mubr.msk.bf16.vlgmr.msra.gmra.mrb[0].mxu0 %vm89_vm1, %v65_v5  ;;  %p1473_p10 = scmp.ne.s32.totalorder %s1147_s22, %s1472_s23  ;;  %p1478_p12 = scmp.lt.s32.totalorder %s1472_s23, %s1472_s23 }
  0x42   :  { %1237 = vmatprep.mubr.msk.bf16.mxu0 %vm1508_vm0, %v1507_v0 }
  0x43   :  { %p1479_p13 = por %p1478_p12, %p1477_p11 }
  0x45   :  { %p1480_p0 = pnand %p1479_p13, %p1473_p10 }
 0x114   :  { %v127_v7 = vpop.f32.mrb[0].mxu0 }
 0x115   :  { %v128_v8 = vadd.f32 %v1159_v6, %v127_v7  ;;  %v1227_v9 = vpop.f32.mrb[1].mxu0 }
 0x116   :  { %v130_v10 = vpop.f32.mrb[2].mxu0 }
 0x117   :  { %v1611_v11 = vpack.c.bf16 %v128_v8, %v128_v8  ;;  %v131_v12 = vadd.f32 %v1159_v6, %v130_v10  ;;  %v1228_v13 = vpop.f32.mrb[3].mxu0 }
 0x119   :  { %142 = vrot.lane.b32.xlu0 %v1611_v11, %s1509_s8  ;;  %v1614_v14 = vpack.c.bf16 %v131_v12, %v131_v12 }
 0x11d   :  { %192 = vrot.lane.b32.xlu0 %v1614_v14, %s1509_s8 }
 0x18b   :  { %v143_v15 = vpop.permute.xlu0 %142 }
 0x18c   :  { %v149_v16 = vsel %vm144_vm2, %v143_v15, 0 }
 0x18d   :  { %1230 = vmatpush3.bf16.xpose.msra.mxu1 %v149_v16 }
 0x18e   :  { %1241 = vmatprep.subr.bf16.mxu1 %v1507_v0 }
 0x18f   :  { %v193_v17 = vpop.permute.xlu0 %192 }
 0x190   :  { %v198_v18 = vsel %vm144_vm2, %v193_v17, 0 }
 0x191   :  { %1236 = vmatpush3.bf16.xpose.msra.mxu0 %v198_v18 }
 0x192   :  { %1247 = vmatprep.subr.bf16.mxu0 %v1507_v0 }
 0x194   :  { %1232 = vmatmul.mubr.msk.bf16.vlgmr.msra.gmra.mrb[0].mxu1 %vm144_vm2, %v1611_v11 }
 0x195   :  { %1243 = vmatprep.mubr.msk.bf16.mxu1 %vm1508_vm0, %v1507_v0 }
 0x198   :  { %1238 = vmatmul.mubr.msk.bf16.vlgmr.msra.gmra.mrb[4].mxu0 %vm144_vm2, %v1614_v14 }
 0x199   :  { %1249 = vmatprep.mubr.msk.bf16.mxu0 %vm1508_vm0, %v1507_v0 }
 0x267   :  { %v185_v22 = vpop.f32.mrb[0].mxu1 }
 0x268   :  { %v240_v24 = vmul.f32 0.35355338, %v185_v22  ;;  %v1233_v25 = vpop.f32.mrb[1].mxu1 }
 0x269   :  { %v188_v26 = vpop.f32.mrb[2].mxu1 }
 0x26a   :  { %v1234_v27 = vpop.f32.mrb[3].mxu1  ;;  %v244_v28 = vsel %vm1629_vm3, %v240_v24, -1e+30 }
 0x26b   :  { %v234_v29 = vpop.f32.mrb[4].mxu0  ;;  %v246_v30 = vsel %vm144_vm2, %v244_v28, -inf }
 0x26c   :  { %v241_v31 = vmul.f32 0.35355338, %v234_v29  ;;  %247 = vmax.xlane.f32.xlu1 %v246_v30  ;;  %v1239_v32 = vpop.f32.mrb[5].mxu0 }
 0x26d   :  { %v237_v33 = vpop.f32.mrb[6].mxu0 }
 0x26e   :  { %v1240_v34 = vpop.f32.mrb[7].mxu0  ;;  %v245_v35 = vsel %vm1629_vm3, %v241_v31, -1e+30 }
 0x26f   :  { %v249_v36 = vsel %vm144_vm2, %v245_v35, -inf }
 0x270   :  { %250 = vmax.xlane.f32.xlu1 %v249_v36 }
 0x281   :  { %270 = vrot.lane.b32.xlu1 %v1611_v11, %s1501_s28 }
 0x285   :  { %319 = vrot.lane.b32.xlu1 %v1614_v14, %s1501_s28  ;;  %s1511_s28 = smov 120  }
 0x289   :  { %369 = vrot.lane.b32.xlu1 %v1611_v11, %s1510_s2 }
 0x2f9   :  { %v248_v37 = vpop.xlane.xlu1 %247 }
 0x2fa   :  { %v252_v38 = vsub.f32 %v244_v28, %v248_v37 }
 0x2fc   :  { %v254_v39 = vmul.f32 1.442695, %v252_v38 }
 0x2fd   :  { %v251_v40 = vpop.xlane.xlu1 %250 }
 0x2fe   :  { %1374 = vpow2.f32 %v254_v39  ;;  %v253_v41 = vsub.f32 %v245_v35, %v251_v40 }
 0x300   :  { %v256_v42 = vmul.f32 1.442695, %v253_v41 }
 0x301   :  { %v271_v43 = vpop.permute.xlu1 %270 }
 0x302   :  { %1376 = vpow2.f32 %v256_v42  ;;  %v277_v44 = vsel %vm275_vm4, %v271_v43, 0 }
 0x303   :  { %1242 = vmatpush3.bf16.msra.mxu1 %v277_v44 }
 0x304   :  { %1253 = vmatprep.subr.bf16.mxu1 %v1507_v0 }
 0x305   :  { %v320_v45 = vpop.permute.xlu1 %319 }
 0x306   :  { %v325_v46 = vsel %vm275_vm4, %v320_v45, 0 }
 0x307   :  { %1248 = vmatpush3.bf16.msra.mxu0 %v325_v46 }
 0x308   :  { %v1375_v47 = vpop.eup %1374  ;;  %1259 = vmatprep.subr.bf16.mxu0 %v1507_v0 }
 0x309   :  { %v258_v48 = vsel %vm144_vm2, %v1375_v47, 0.0  ;;  %v370_v51 = vpop.permute.xlu1 %369 }
 0x30a   :  { %259 = vadd.xlane.f32.xlu0 %v258_v48  ;;  %v375_v58 = vsel %vm144_vm2, %v370_v51, 0 }
 0x30c   :  { %v1377_v49 = vpop.eup %1376 }
 0x30d   :  { %v261_v50 = vsel %vm144_vm2, %v1377_v49, 0.0 }
 0x30e   :  { %262 = vadd.xlane.f32.xlu1 %v261_v50 }
 0x31f   :  { %419 = vrot.lane.b32.xlu1 %v1614_v14, %s1510_s2 }
 0x320   :  { %367 = vrot.lane.b32.xlu0 %v1611_v11, %s1511_s28 }
 0x323   :  { %417 = vrot.lane.b32.xlu1 %v1614_v14, %s1511_s28 }
 0x397   :  { %v260_v52 = vpop.xlane.xlu0 %259 }
 0x398   :  { %1378 = vrcp.f32 %v260_v52 }
 0x39b   :  { %v263_v53 = vpop.xlane.xlu1 %262  ;;  %v368_v63 = vpop.permute.xlu0 %367 }
 0x39c   :  { %1380 = vrcp.f32 %v263_v53 }
 0x39f   :  { %v420_v60 = vpop.permute.xlu1 %419 }
 0x3a0   :  { %v425_v62 = vsel %vm144_vm2, %v420_v60, 0 }
 0x3a2   :  { %v1379_v54 = vpop.eup %1378 }
 0x3a3   :  { %v266_v55 = vmul.f32 %v1379_v54, %v1375_v47  ;;  %v418_v1 = vpop.permute.xlu1 %417 }
 0x3a5   :  { %v268_v56 = vpack.c.bf16 %v266_v55, %v266_v55 }
 0x3a6   :  { %v1381_v57 = vpop.eup %1380 }
 0x3a7   :  { %v267_v59 = vmul.f32 %v1381_v57, %v1377_v49  ;;  %1244 = vmatmul.mubr.msk.bf16.vlgmr.msra.gmra.mrb[4].mxu1 %vm144_vm2, %v268_v56 }
 0x3a8   :  { %1254 = vmatpush3.bf16.xpose.msra.mxu1 %v375_v58  ;;  %1255 = vmatprep.mubr.msk.bf16.mxu1 %vm1508_vm0, %v1507_v0 }
 0x3a9   :  { %v269_v61 = vpack.c.bf16 %v267_v59, %v267_v59  ;;  %1265 = vmatprep.subr.bf16.mxu1 %v1507_v0 }
 0x3ab   :  { %1250 = vmatmul.mubr.msk.bf16.vlgmr.msra.gmra.mrb[8].mxu0 %vm144_vm2, %v269_v61 }
 0x3ac   :  { %1260 = vmatpush3.bf16.xpose.msra.mxu0 %v425_v62  ;;  %1261 = vmatprep.mubr.msk.bf16.mxu0 %vm1508_vm0, %v1507_v0 }
 0x3ad   :  { %1271 = vmatprep.subr.bf16.mxu0 %v1507_v0 }
 0x3af   :  { %1256 = vmatmul.mubr.msk.bf16.vlgmr.msra.gmra.mrb[8].mxu1 %vm144_vm2, %v368_v63 }
 0x3b0   :  { %1267 = vmatprep.mubr.msk.bf16.mxu1 %vm1508_vm0, %v1507_v0 }
 0x3b3   :  { %1262 = vmatmul.mubr.msk.bf16.vlgmr.msra.gmra.mrb[12].mxu0 %vm144_vm2, %v418_v1 }
 0x3b4   :  { %1273 = vmatprep.mubr.msk.bf16.mxu0 %vm1508_vm0, %v1507_v0 }
 0x47a   :  { %v1669_v2 = vpop.f32.mrb[4].mxu1 }
 0x47b   :  { %v1245_v3 = vpop.f32.mrb[5].mxu1 }
 0x47c   :  { %v316_v4 = vpop.f32.mrb[6].mxu1 }
 0x47d   :  { %v1246_v5 = vpop.f32.mrb[7].mxu1 }
 0x47e   :  { %v1671_v6 = vpop.f32.mrb[8].mxu0 }
 0x47f   :  { %v1251_v7 = vpop.f32.mrb[9].mxu0 }
 0x480   :  { %v364_v8 = vpop.f32.mrb[10].mxu0 }
 0x481   :  { %v1252_v9 = vpop.f32.mrb[11].mxu0 }
 0x482   :  { %v411_v10 = vpop.f32.mrb[8].mxu1 }
 0x483   :  { %v467_v12 = vmul.f32 0.35355338, %v411_v10  ;;  %v1257_v13 = vpop.f32.mrb[9].mxu1 }
 0x484   :  { %v414_v15 = vpop.f32.mrb[10].mxu1 }
 0x485   :  { %v1258_v16 = vpop.f32.mrb[11].mxu1  ;;  %v469_v17 = vsel %vm1629_vm3, %v467_v12, -1e+30 }
 0x486   :  { %v461_v18 = vpop.f32.mrb[12].mxu0  ;;  %v471_v19 = vsel %vm144_vm2, %v469_v17, -inf }
 0x487   :  { %v468_v20 = vmul.f32 0.35355338, %v461_v18  ;;  %472 = vmax.xlane.f32.xlu1 %v471_v19  ;;  %v1263_v21 = vpop.f32.mrb[13].mxu0 }
 0x488   :  { %v464_v22 = vpop.f32.mrb[14].mxu0 }
 0x489   :  { %v1264_v24 = vpop.f32.mrb[15].mxu0  ;;  %v470_v25 = vsel %vm1629_vm3, %v468_v20, -1e+30 }
 0x48a   :  { %v474_v26 = vsel %vm144_vm2, %v470_v25, -inf }
 0x48b   :  { %475 = vmax.xlane.f32.xlu0 %v474_v26 }
 0x498   :  { %495 = vrot.lane.b32.xlu1 %v1611_v11, %s1512_s9 }
 0x49c   :  { %593 = vrot.lane.b32.xlu1 %v1611_v11, %s1513_s10 }
 0x4a1   :  { %543 = vrot.lane.b32.xlu0 %v1614_v14, %s1512_s9 }
 0x4a5   :  { %591 = vrot.lane.b32.xlu0 %v1611_v11, %s1514_s11 }
 0x514   :  { %v473_v27 = vpop.xlane.xlu1 %472 }
 0x515   :  { %v477_v28 = vsub.f32 %v469_v17, %v473_v27 }
 0x517   :  { %v479_v29 = vmul.f32 1.442695, %v477_v28 }
 0x518   :  { %v496_v30 = vpop.permute.xlu1 %495  ;;  %v476_v31 = vpop.xlane.xlu0 %475 }
 0x519   :  { %1382 = vpow2.f32 %v479_v29  ;;  %v501_v32 = vsel %vm275_vm4, %v496_v30, 0  ;;  %v478_v33 = vsub.f32 %v470_v25, %v476_v31 }
 0x51a   :  { %1266 = vmatpush3.bf16.msra.mxu1 %v501_v32 }
 0x51b   :  { %v481_v34 = vmul.f32 1.442695, %v478_v33  ;;  %1277 = vmatprep.subr.bf16.mxu1 %v1507_v0 }
 0x51c   :  { %v544_v35 = vpop.permute.xlu0 %543  ;;  %v594_v41 = vpop.permute.xlu1 %593 }
 0x51d   :  { %1384 = vpow2.f32 %v481_v34  ;;  %v549_v36 = vsel %vm275_vm4, %v544_v35, 0  ;;  %v599_v48 = vsel %vm144_vm2, %v594_v41, 0 }
 0x51e   :  { %1272 = vmatpush3.bf16.msra.mxu0 %v549_v36 }
 0x51f   :  { %1283 = vmatprep.subr.bf16.mxu0 %v1507_v0 }
 0x520   :  { %v592_v53 = vpop.permute.xlu0 %591 }
 0x523   :  { %v1383_v37 = vpop.eup %1382 }
 0x524   :  { %v483_v38 = vsel %vm144_vm2, %v1383_v37, 0.0 }
 0x525   :  { %484 = vadd.xlane.f32.xlu1 %v483_v38 }
 0x527   :  { %v1385_v39 = vpop.eup %1384 }
 0x528   :  { %v486_v40 = vsel %vm144_vm2, %v1385_v39, 0.0 }
 0x529   :  { %487 = vadd.xlane.f32.xlu1 %v486_v40 }
 0x53a   :  { %643 = vrot.lane.b32.xlu1 %v1614_v14, %s1513_s10 }
 0x53e   :  { %641 = vrot.lane.b32.xlu1 %v1614_v14, %s1514_s11 }
 0x5b2   :  { %v485_v42 = vpop.xlane.xlu1 %484 }
 0x5b3   :  { %1386 = vrcp.f32 %v485_v42 }
 0x5b6   :  { %v488_v43 = vpop.xlane.xlu1 %487 }
 0x5b7   :  { %1388 = vrcp.f32 %v488_v43 }
 0x5ba   :  { %v644_v50 = vpop.permute.xlu1 %643 }
 0x5bb   :  { %v649_v52 = vsel %vm144_vm2, %v644_v50, 0 }
 0x5bd   :  { %v1387_v44 = vpop.eup %1386 }
 0x5be   :  { %v491_v45 = vmul.f32 %v1387_v44, %v1383_v37  ;;  %v642_v54 = vpop.permute.xlu1 %641 }
 0x5c0   :  { %v493_v46 = vpack.c.bf16 %v491_v45, %v491_v45 }
 0x5c1   :  { %v1389_v47 = vpop.eup %1388 }
 0x5c2   :  { %v492_v49 = vmul.f32 %v1389_v47, %v1385_v39  ;;  %1268 = vmatmul.mubr.msk.bf16.vlgmr.msra.gmra.mrb[12].mxu1 %vm144_vm2, %v493_v46 }
 0x5c3   :  { %1278 = vmatpush3.bf16.xpose.msra.mxu1 %v599_v48  ;;  %1279 = vmatprep.mubr.msk.bf16.mxu1 %vm1508_vm0, %v1507_v0 }
 0x5c4   :  { %v494_v51 = vpack.c.bf16 %v492_v49, %v492_v49  ;;  %1289 = vmatprep.subr.bf16.mxu1 %v1507_v0 }
 0x5c6   :  { %1274 = vmatmul.mubr.msk.bf16.vlgmr.msra.gmra.mrb[16].mxu0 %vm144_vm2, %v494_v51 }
 0x5c7   :  { %1284 = vmatpush3.bf16.xpose.msra.mxu0 %v649_v52  ;;  %1285 = vmatprep.mubr.msk.bf16.mxu0 %vm1508_vm0, %v1507_v0 }
 0x5c8   :  { %1295 = vmatprep.subr.bf16.mxu0 %v1507_v0 }
 0x5ca   :  { %1280 = vmatmul.mubr.msk.bf16.vlgmr.msra.gmra.mrb[16].mxu1 %vm144_vm2, %v592_v53 }
 0x5cb   :  { %1291 = vmatprep.mubr.msk.bf16.mxu1 %vm1508_vm0, %v1507_v0 }
 0x5ce   :  { %1286 = vmatmul.mubr.msk.bf16.vlgmr.msra.gmra.mrb[20].mxu0 %vm144_vm2, %v642_v54 }
 0x5cf   :  { %1297 = vmatprep.mubr.msk.bf16.mxu0 %vm1508_vm0, %v1507_v0 }
 0x695   :  { %v1707_v55 = vpop.f32.mrb[12].mxu1 }
 0x696   :  { %v1269_v56 = vpop.f32.mrb[13].mxu1 }
 0x697   :  { %v540_v57 = vpop.f32.mrb[14].mxu1 }
 0x698   :  { %v1270_v58 = vpop.f32.mrb[15].mxu1 }
 0x699   :  { %v1709_v59 = vpop.f32.mrb[16].mxu0 }
 0x69a   :  { %v1355_v60 = vpack.i.bf16 %v1709_v59, %v1707_v55  ;;  %v1275_v61 = vpop.f32.mrb[17].mxu0 }
 0x69b   :  { %v588_v62 = vpop.f32.mrb[18].mxu0 }
 0x69c   :  { %v1276_v63 = vpop.f32.mrb[19].mxu0 }
 0x69d   :  { %v635_v1 = vpop.f32.mrb[16].mxu1 }
 0x69e   :  { %v691_v3 = vmul.f32 0.35355338, %v635_v1  ;;  %v1281_v4 = vpop.f32.mrb[17].mxu1 }
 0x69f   :  { %v638_v5 = vpop.f32.mrb[18].mxu1 }
 0x6a0   :  { %v1282_v7 = vpop.f32.mrb[19].mxu1  ;;  %v693_v8 = vsel %vm1629_vm3, %v691_v3, -1e+30 }
 0x6a1   :  { %v685_v9 = vpop.f32.mrb[20].mxu0  ;;  %v695_v10 = vsel %vm144_vm2, %v693_v8, -inf }
 0x6a2   :  { %v692_v12 = vmul.f32 0.35355338, %v685_v9  ;;  %696 = vmax.xlane.f32.xlu0 %v695_v10  ;;  %v1287_v13 = vpop.f32.mrb[21].mxu0 }
 0x6a3   :  { %v688_v15 = vpop.f32.mrb[22].mxu0 }
 0x6a4   :  { %v1288_v16 = vpop.f32.mrb[23].mxu0  ;;  %v694_v17 = vsel %vm1629_vm3, %v692_v12, -1e+30 }
 0x6a5   :  { %v698_v18 = vsel %vm144_vm2, %v694_v17, -inf }
 0x6a6   :  { %699 = vmax.xlane.f32.xlu1 %v698_v18 }
 0x6b7   :  { %719 = vrot.lane.b32.xlu1 %v1611_v11, %s1515_s12 }
 0x6bb   :  { %817 = vrot.lane.b32.xlu1 %v1611_v11, %s1516_s13 }
 0x6bf   :  { %867 = vrot.lane.b32.xlu1 %v1614_v14, %s1516_s13 }
 0x6c3   :  { %865 = vrot.lane.b32.xlu1 %v1614_v14, %s1517_s14 }
 0x72f   :  { %v697_v19 = vpop.xlane.xlu0 %696 }
 0x730   :  { %v701_v20 = vsub.f32 %v693_v8, %v697_v19 }
 0x732   :  { %v703_v21 = vmul.f32 1.442695, %v701_v20 }
 0x733   :  { %v700_v22 = vpop.xlane.xlu1 %699 }
 0x734   :  { %1390 = vpow2.f32 %v703_v21  ;;  %v702_v24 = vsub.f32 %v694_v17, %v700_v22 }
 0x736   :  { %v705_v25 = vmul.f32 1.442695, %v702_v24 }
 0x737   :  { %v720_v26 = vpop.permute.xlu1 %719 }
 0x738   :  { %1392 = vpow2.f32 %v705_v25  ;;  %v725_v27 = vsel %vm275_vm4, %v720_v26, 0 }
 0x739   :  { %1290 = vmatpush3.bf16.msra.mxu1 %v725_v27 }
 0x73a   :  { %1301 = vmatprep.subr.bf16.mxu1 %v1507_v0 }
 0x73b   :  { %v818_v37 = vpop.permute.xlu1 %817 }
 0x73c   :  { %v823_v41 = vsel %vm144_vm2, %v818_v37, 0 }
 0x73e   :  { %v1391_v28 = vpop.eup %1390 }
 0x73f   :  { %v707_v29 = vsel %vm144_vm2, %v1391_v28, 0.0  ;;  %v868_v43 = vpop.permute.xlu1 %867 }
 0x740   :  { %708 = vadd.xlane.f32.xlu0 %v707_v29  ;;  %v873_v45 = vsel %vm144_vm2, %v868_v43, 0 }
 0x742   :  { %v1393_v30 = vpop.eup %1392 }
 0x743   :  { %v710_v31 = vsel %vm144_vm2, %v1393_v30, 0.0  ;;  %v866_v47 = vpop.permute.xlu1 %865 }
 0x744   :  { %711 = vadd.xlane.f32.xlu0 %v710_v31 }
 0x75a   :  { %767 = vrot.lane.b32.xlu0 %v1614_v14, %s1515_s12 }
 0x75e   :  { %815 = vrot.lane.b32.xlu0 %v1611_v11, %s1517_s14 }
 0x7cd   :  { %v709_v32 = vpop.xlane.xlu0 %708 }
 0x7ce   :  { %1394 = vrcp.f32 %v709_v32 }
 0x7d1   :  { %v712_v33 = vpop.xlane.xlu0 %711 }
 0x7d2   :  { %1396 = vrcp.f32 %v712_v33  ;;  %v1373_v33 = vld [vmem:[#allocation7 + $0x8] sm:$0xff]  }
 0x7d5   :  { %v768_v34 = vpop.permute.xlu0 %767 }
 0x7d6   :  { %v773_v35 = vsel %vm275_vm4, %v768_v34, 0 }
 0x7d7   :  { %1296 = vmatpush3.bf16.msra.mxu0 %v773_v35 }
 0x7d8   :  { %v1395_v36 = vpop.eup %1394  ;;  %1307 = vmatprep.subr.bf16.mxu0 %v1507_v0 }
 0x7d9   :  { %v715_v38 = vmul.f32 %v1395_v36, %v1391_v28  ;;  %v816_v46 = vpop.permute.xlu0 %815 }
 0x7db   :  { %v717_v39 = vpack.c.bf16 %v715_v38, %v715_v38 }
 0x7dc   :  { %v1397_v40 = vpop.eup %1396 }
 0x7dd   :  { %v716_v42 = vmul.f32 %v1397_v40, %v1393_v30  ;;  %1292 = vmatmul.mubr.msk.bf16.vlgmr.msra.gmra.mrb[20].mxu1 %vm144_vm2, %v717_v39 }
 0x7de   :  { %1302 = vmatpush3.bf16.xpose.msra.mxu1 %v823_v41  ;;  %1303 = vmatprep.mubr.msk.bf16.mxu1 %vm1508_vm0, %v1507_v0 }
 0x7df   :  { %v718_v44 = vpack.c.bf16 %v716_v42, %v716_v42  ;;  %1313 = vmatprep.subr.bf16.mxu1 %v1507_v0 }
 0x7e1   :  { %1298 = vmatmul.mubr.msk.bf16.vlgmr.msra.gmra.mrb[24].mxu0 %vm144_vm2, %v718_v44 }
 0x7e2   :  { %1308 = vmatpush3.bf16.xpose.msra.mxu0 %v873_v45  ;;  %1309 = vmatprep.mubr.msk.bf16.mxu0 %vm1508_vm0, %v1507_v0 }
 0x7e3   :  { %1319 = vmatprep.subr.bf16.mxu0 %v1507_v0 }
 0x7e5   :  { %1304 = vmatmul.mubr.msk.bf16.vlgmr.msra.gmra.mrb[24].mxu1 %vm144_vm2, %v816_v46 }
 0x7e6   :  { %1315 = vmatprep.mubr.msk.bf16.mxu1 %vm1508_vm0, %v1507_v0 }
 0x7e9   :  { %1310 = vmatmul.mubr.msk.bf16.vlgmr.msra.gmra.mrb[28].mxu0 %vm144_vm2, %v866_v47 }
 0x7ea   :  { %1321 = vmatprep.mubr.msk.bf16.mxu0 %vm1508_vm0, %v1507_v0 }
 0x8b0   :  { %v761_v48 = vpop.f32.mrb[20].mxu1 }
 0x8b1   :  { %v1293_v49 = vpop.f32.mrb[21].mxu1 }
 0x8b2   :  { %v764_v50 = vpop.f32.mrb[22].mxu1 }
 0x8b3   :  { %v1294_v51 = vpop.f32.mrb[23].mxu1 }
 0x8b4   :  { %v809_v52 = vpop.f32.mrb[24].mxu0 }
 0x8b5   :  { %v1360_v53 = vpack.i.bf16 %v809_v52, %v761_v48  ;;  %v1299_v54 = vpop.f32.mrb[25].mxu0 }
 0x8b6   :  { %v812_v56 = vpop.f32.mrb[26].mxu0 }
 0x8b7   :  { %v1300_v57 = vpop.f32.mrb[27].mxu0 }
 0x8b8   :  { %v859_v58 = vpop.f32.mrb[24].mxu1 }
 0x8b9   :  { %v915_v61 = vmul.f32 0.35355338, %v859_v58  ;;  %v1305_v62 = vpop.f32.mrb[25].mxu1 }
 0x8ba   :  { %v862_v63 = vpop.f32.mrb[26].mxu1 }
 0x8bb   :  { %v1306_v1 = vpop.f32.mrb[27].mxu1  ;;  %v917_v3 = vsel %vm1629_vm3, %v915_v61, -1e+30  ;;  %v1179_v61 = vld [vmem:[%s1798_s4] ss:$0 sm:$0xff] }
 0x8bc   :  { %v909_v4 = vpop.f32.mrb[28].mxu0  ;;  %v919_v5 = vsel %vm144_vm2, %v917_v3, -inf }
 0x8bd   :  { %v916_v7 = vmul.f32 0.35355338, %v909_v4  ;;  %920 = vmax.xlane.f32.xlu0 %v919_v5  ;;  %v1311_v8 = vpop.f32.mrb[29].mxu0 }
 0x8be   :  { %v912_v9 = vpop.f32.mrb[30].mxu0 }
 0x8bf   :  { %v1312_v10 = vpop.f32.mrb[31].mxu0  ;;  %v918_v12 = vsel %vm1629_vm3, %v916_v7, -1e+30 }
 0x8c0   :  { %v922_v13 = vsel %vm144_vm2, %v918_v12, -inf }
 0x8c1   :  { %923 = vmax.xlane.f32.xlu1 %v922_v13 }
 0x8d2   :  { %943 = vrot.lane.b32.xlu1 %v1611_v11, %s1518_s15 }
 0x8d6   :  { %1356 = vrot.lane.b32.xlu1 %v1355_v60, %s1505_s17 }
 0x8da   :  { %1361 = vrot.lane.b32.xlu1 %v1360_v53, %s1519_s16 }
 0x94a   :  { %v921_v15 = vpop.xlane.xlu0 %920 }
 0x94b   :  { %v925_v16 = vsub.f32 %v917_v3, %v921_v15 }
 0x94d   :  { %v927_v17 = vmul.f32 1.442695, %v925_v16 }
 0x94e   :  { %v924_v18 = vpop.xlane.xlu1 %923 }
 0x94f   :  { %1398 = vpow2.f32 %v927_v17  ;;  %v926_v23 = vsub.f32 %v918_v12, %v924_v18 }
 0x951   :  { %v929_v19 = vmul.f32 1.442695, %v926_v23 }
 0x952   :  { %v944_v20 = vpop.permute.xlu1 %943 }
 0x953   :  { %1400 = vpow2.f32 %v929_v19  ;;  %v949_v21 = vsel %vm275_vm4, %v944_v20, 0 }
 0x954   :  { %1314 = vmatpush3.bf16.msra.mxu1 %v949_v21 }
 0x955   :  { %1325 = vmatprep.subr.bf16.mxu1 %v1507_v0 }
 0x956   :  { %v1357_v43 = vpop.permute.xlu1 %1356 }
 0x957   :  { %v1359_v45 = vunpack.i.h.bf16 %v1357_v43  ;;  %v1358_v46 = vunpack.i.l.bf16 %v1357_v43 }
 0x959   :  { %v1399_v11 = vpop.eup %1398  ;;  %v1064_v49 = vsel %vm144_vm2, %v1671_v6, %v1359_v45  ;;  %v1063_v50 = vsel %vm144_vm2, %v1669_v2, %v1358_v46 }
 0x95a   :  { %v931_v55 = vsel %vm144_vm2, %v1399_v11, 0.0  ;;  %v1362_v44 = vpop.permute.xlu1 %1361 }
 0x95b   :  { %932 = vadd.xlane.f32.xlu0 %v931_v55  ;;  %v1364_v47 = vunpack.i.h.bf16 %v1362_v44  ;;  %v1363_v48 = vunpack.i.l.bf16 %v1362_v44 }
 0x95d   :  { %v1401_v59 = vpop.eup %1400  ;;  %v1066_v53 = vsel %vm1065_vm5, %v1063_v50, %v1363_v48  ;;  %v1067_v54 = vsel %vm1065_vm5, %v1064_v49, %v1364_v47 }
 0x95e   :  { %v934_v60 = vsel %vm144_vm2, %v1401_v59, 0.0 }
 0x95f   :  { %935 = vadd.xlane.f32.xlu0 %v934_v60 }
 0x975   :  { %991 = vrot.lane.b32.xlu0 %v1614_v14, %s1518_s15  ;;  %v1372_v14 = vld [vmem:[#allocation7] sm:$0xff]  }
 0x9e8   :  { %v933_v22 = vpop.xlane.xlu0 %932 }
 0x9e9   :  { %1402 = vrcp.f32 %v933_v22 }
 0x9ec   :  { %v936_v24 = vpop.xlane.xlu0 %935 }
 0x9ed   :  { %1404 = vrcp.f32 %v936_v24 }
 0x9f0   :  { %v992_v25 = vpop.permute.xlu0 %991 }
 0x9f1   :  { %v997_v26 = vsel %vm275_vm4, %v992_v25, 0 }
 0x9f2   :  { %1320 = vmatpush3.bf16.msra.mxu0 %v997_v26 }
 0x9f3   :  { %v1403_v27 = vpop.eup %1402 }
 0x9f4   :  { %v939_v28 = vmul.f32 %v1403_v27, %v1399_v11 }
 0x9f6   :  { %v941_v29 = vpack.c.bf16 %v939_v28, %v939_v28 }
 0x9f7   :  { %v1405_v30 = vpop.eup %1404 }
 0x9f8   :  { %v940_v31 = vmul.f32 %v1405_v30, %v1401_v59  ;;  %1316 = vmatmul.mubr.msk.bf16.vlgmr.msra.gmra.mrb[28].mxu1 %vm144_vm2, %v941_v29 }
 0x9f9   :  { %1329 = vmatprep.mubr.msk.bf16.mxu1 %vm1508_vm0, %v1507_v0  ;;  %1326 = vmatpush3.bf16.msra.mxu1 %v1372_v14 }
 0x9fa   :  { %v942_v32 = vpack.c.bf16 %v940_v31, %v940_v31  ;;  %1327 = vmatprep.subr.bf16.mxu1 %v1507_v0 }
 0x9fc   :  { %1322 = vmatmul.mubr.msk.bf16.vlgmr.msra.gmra.mrb[32].mxu0 %vm144_vm2, %v942_v32 }
 0x9fd   :  { %1328 = vmatpush3.bf16.msra.mxu1 %v1373_v33 }
 0xacb   :  { %v985_v34 = vpop.f32.mrb[28].mxu1 }
 0xacc   :  { %v1317_v35 = vpop.f32.mrb[29].mxu1 }
 0xacd   :  { %v988_v36 = vpop.f32.mrb[30].mxu1 }
 0xace   :  { %v1318_v37 = vpop.f32.mrb[31].mxu1 }
 0xacf   :  { %v1033_v38 = vpop.f32.mrb[32].mxu0 }
 0xad0   :  { %v1365_v39 = vpack.i.bf16 %v1033_v38, %v985_v34  ;;  %v1323_v40 = vpop.f32.mrb[33].mxu0 }
 0xad1   :  { %v1036_v41 = vpop.f32.mrb[34].mxu0 }
 0xad2   :  { %1366 = vrot.lane.b32.xlu0 %v1365_v39, %s1520_s18  ;;  %v1324_v42 = vpop.f32.mrb[35].mxu0 }
 0xb44   :  { %v1367_v0 = vpop.permute.xlu0 %1366 }
 0xb45   :  { %v1369_v51 = vunpack.i.h.bf16 %v1367_v0  ;;  %v1368_v52 = vunpack.i.l.bf16 %v1367_v0 }
 0xb47   :  { %v1070_v56 = vsel %vm1068_vm6, %v1067_v54, %v1369_v51  ;;  %v1069_v57 = vsel %vm1068_vm6, %v1066_v53, %v1368_v52 }
 0xb48   :  { %v1071_v58 = vpack.c.bf16 %v1070_v56, %v1069_v57 }
 0xb4a   :  { %1330 = vmatmul.mubr.msk.bf16.vlgmr.msra.gmra.mrb[32].mxu1 %vm89_vm1, %v1071_v58 }
 0xc1d   :  { %v1132_v62 = vpop.f32.mrb[32].mxu1 }
 0xc1e   :  { %v1133_v6 = vadd.f32 %v1179_v61, %v1132_v62  ;;  %v1331_v63 = vpop.f32.mrb[33].mxu1 }
 0xc1f   :  { %v1135_v1 = vpop.f32.mrb[34].mxu1 }
 0xc20   :  { %1139 = vst.msk [vmem:[#allocation8] sm:$0xff] %vm89_vm1, %v1133_v6  ;;  %v1136_v2 = vadd.f32 %v1179_v61, %v1135_v1  ;;  %v1332_v3 = vpop.f32.mrb[35].mxu1 }
 0xc22   :  { %1140 = vst.msk [vmem:[#allocation8 + $0x8] sm:$0xff] %vm89_vm1, %v1136_v2 }
 0xc23   :  { %1483 = shalt.err (!%p1480_p0)
}
 0xc24   :  { %s1484_s25 = scalar_lea.hbm %s1799_s5, 256 }
 0xc25   :  { %p1485_p1 = scmp.ne.s32.totalorder %s1799_s5, %s1484_s25  ;;  %p1488_p2 = scmp.lt.u32.totalorder %s1484_s25, %s1799_s5 }
 0xc27   :  { %p1490_p3 = pnand %p1488_p2, %p1485_p1 }
 0xc29   :  { %1493 = shalt.err (!%p1490_p3)
}
 0xc2a   :  { %1152 = dma.vmem_to_hbm [thread:$0]  %s1147_s22, 256, %s1799_s5, [#allocation4], %s1504_s1, %s1504_s1, %s1505_s17  }
 0xc2b   :  { %1498 = dma.done.wait [#allocation4], 256  }
 0xc2c   :  { %1499 = vsyncadd [#allocation4], 4294967040 }
 0xc2d   :  { %1156 = vsyncpa [#allocation3], 1 }
 0xc2e   :  { %1157 = vsyncpa [#allocation6], 1 }
 0xc2f   :  { %1158 = vsyncpa [#allocation4], 1 }

</bundles_post_ra>
